<compile_context>
chip_gen: v6e
topology: v6e:2x2x1
jax: 0.10.0
libtpu: 0.0.40
codegen_flags: <defaults>
</compile_context>

<pallas_src>
import math

import jax
import jax.numpy as jnp
import numpy as np
from jax.experimental import pallas as pl
from jax.experimental.pallas import tpu as pltpu

MXU_DTYPE = jnp.bfloat16  # MXU operand dtype; accumulation stays f32


def _gelu(x):
    # tanh-approximate GELU (EUP tanh). nn.GELU() default is the exact erf form;
    # max |diff| ~1e-3, accepted per the perf review.
    # TODO(synk): switch back to exact erf GELU if bit-level parity with PyTorch is required.
    c = math.sqrt(2.0 / math.pi)
    return 0.5 * x * (1.0 + jnp.tanh(c * (x + 0.044715 * (x * x * x))))


def irffn_kernel(x_ref, halo_ref, w1_ref, c1_ref, wdw_ref, c2_ref,
                 w2_ref, c3_ref, o_ref):
    """One (batch b, L-tile i) grid step, channels-last layout.

    x_ref   : (1, TL, C)  f32   input tile
    halo_ref: (1, 1, 2, C) f32  x rows [i*TL-1] and [(i+1)*TL] (masked at seq ends)
    w1_ref  : (C, E) bf16       conv1 weight, BN scale folded in
    c1_ref  : (1, E) f32        conv1 bias + BN shift
    wdw_ref : (3, E) f32        depthwise weight, BN scale folded in
    c2_ref  : (1, E) f32
    w2_ref  : (E, C) bf16       conv2 weight, BN scale folded in
    c3_ref  : (1, C) f32
    o_ref   : (1, TL, C) f32
    """
    i = pl.program_id(1)
    n_l = pl.num_programs(1)

    x = x_ref[0]                                   # (TL, C) f32
    tl = x.shape[0]
    w1 = w1_ref[...]
    c1 = c1_ref[...]

    # ---- conv1 (1x1) + folded BN + GELU : bf16 MXU GEMM, f32 accumulation ----
    h1 = jnp.dot(x.astype(w1.dtype), w1, preferred_element_type=jnp.float32)
    h1 = _gelu(h1 + c1)                            # (TL, E) f32

    # ---- halo rows: recompute h1 for the neighbouring rows (1 row of GEMM each) ----
    halo = halo_ref[0, 0]                          # (2, C) f32
    h_halo = jnp.dot(halo.astype(w1.dtype), w1, preferred_element_type=jnp.float32)
    h_halo = _gelu(h_halo + c1)                    # (2, E)
    prev_valid = (i > 0).astype(jnp.float32)       # zero padding at sequence start
    next_valid = (i < n_l - 1).astype(jnp.float32)  # zero padding at sequence end
    prev_row = h_halo[0:1, :] * prev_valid         # (1, E)
    next_row = h_halo[1:2, :] * next_valid         # (1, E)

    # ---- depthwise conv1d k=3, pad=1 + folded BN + GELU ----
    # positive-shift rolls only (XLU); fix the two wrapped edge rows with one (TL,1) mask.
    wdw = wdw_ref[...]                             # (3, E)
    rows = jax.lax.broadcasted_iota(jnp.int32, (tl, 1), 0)
    h_prev = jnp.where(rows == 0, prev_row, pltpu.roll(h1, shift=1, axis=0))
    h_next = jnp.where(rows == tl - 1, next_row, pltpu.roll(h1, shift=tl - 1, axis=0))
    h2 = h_prev * wdw[0:1, :] + h1 * wdw[1:2, :] + h_next * wdw[2:3, :]
    h2 = _gelu(h2 + c2_ref[...])                   # (TL, E) f32

    # ---- conv2 (1x1) + folded BN, residual ----
    w2 = w2_ref[...]
    h3 = jnp.dot(h2.astype(w2.dtype), w2, preferred_element_type=jnp.float32)
    o_ref[0] = x + h3 + c3_ref[...]                # (TL, C) f32


def _choose_l_tile(L, max_tile=512):
    """Largest tile <= max_tile that evenly divides L (prefer 128-, then 8-aligned)."""
    if L <= max_tile:
        return L
    for align in (128, 8, 1):
        for t in range(max_tile, align - 1, -1):
            if t % align == 0 and L % t == 0:
                return t
    return L


def irffn_forward_nlc(x_nlc, params, *, max_l_tile=512):
    """IRFFN forward, channels-last. x_nlc: (B, L, C) f32 -> (B, L, C) f32."""
    B, L, C = x_nlc.shape
    E = params["w1"].shape[1]
    TL = _choose_l_tile(L, max_l_tile)
    n_l = L // TL

    # Halo rows for the k=3 depthwise conv: for tile i we need x[i*TL-1] and x[(i+1)*TL].
    # Indices are clamped at the sequence ends; the kernel zeroes those contributions,
    # reproducing the zero padding of the depthwise input.
    idx_prev = jnp.clip(jnp.arange(n_l) * TL - 1, 0, L - 1)
    idx_next = jnp.clip((jnp.arange(n_l) + 1) * TL, 0, L - 1)
    halo = jnp.stack([x_nlc[:, idx_prev, :], x_nlc[:, idx_next, :]], axis=2)  # (B,n_l,2,C)

    cost = pl.CostEstimate(
        flops=int(B * L * (4 * C * E + 8 * E + 4 * C)),
        transcendentals=int(2 * B * L * E),
        bytes_accessed=int(4 * 2 * B * L * C + 4 * B * n_l * 2 * C
                           + 2 * 2 * C * E + 4 * (5 * E + 2 * C)),
    )

    def rep2(shape):  # replicated (constant) weight spec over the (B, L-tile) grid
        return pl.BlockSpec(shape, lambda b, i: (0, 0))

    out = pl.pallas_call(
        irffn_kernel,
        out_shape=jax.ShapeDtypeStruct((B, L, C), x_nlc.dtype),
        grid_spec=pltpu.PrefetchScalarGridSpec(
            num_scalar_prefetch=0,
            grid=(B, n_l),
            in_specs=[
                pl.BlockSpec((1, TL, C), lambda b, i: (b, i, 0)),       # x tile
                pl.BlockSpec((1, 1, 2, C), lambda b, i: (b, i, 0, 0)),  # halo rows
                rep2((C, E)), rep2((1, E)),                             # w1, c1
                rep2((3, E)), rep2((1, E)),                             # wdw, c2
                rep2((E, C)), rep2((1, C)),                             # w2, c3
            ],
            out_specs=pl.BlockSpec((1, TL, C), lambda b, i: (b, i, 0)),
        ),
        compiler_params=pltpu.CompilerParams(
            dimension_semantics=("parallel", "parallel"),
            vmem_limit_bytes=48 * 1024 * 1024),
        cost_estimate=cost,
    )(x_nlc, halo, params["w1"], params["c1"], params["wdw"], params["c2"],
      params["w2"], params["c3"])
    return out


def irffn_forward(x_ncl, params, **kw):
    """PyTorch-layout entry point: (B, C, L) -> (B, C, L).

    NOTE(perf): prefer irffn_forward_nlc and keep activations channels-last end
    to end — each NCL<->NLC transpose here is a full HBM read+write pass.
    """
    x = jnp.transpose(x_ncl, (0, 2, 1))
    out = irffn_forward_nlc(x, params, **kw)
    return jnp.transpose(out, (0, 2, 1))


def make_params(key, C, R, eps=1e-5, mxu_dtype=MXU_DTYPE):
    """Deterministic synthetic params. Inference-mode BatchNorm folded:
    multiplicative part into the conv weights, additive part into per-channel shifts."""
    E = int(C * R)
    ks = jax.random.split(key, 18)

    def bn(kg, kb, km, kv, n):
        gamma = 1.0 + 0.1 * jax.random.normal(kg, (n,), jnp.float32)
        beta = 0.1 * jax.random.normal(kb, (n,), jnp.float32)
        mu = 0.1 * jax.random.normal(km, (n,), jnp.float32)
        var = jax.random.uniform(kv, (n,), jnp.float32, 0.5, 1.5)
        return gamma / jnp.sqrt(var + eps), beta, mu

    # conv1: torch weight (E, C, 1) -> (C, E)
    w1 = 0.2 * jax.random.normal(ks[0], (C, E), jnp.float32)
    b1 = 0.1 * jax.random.normal(ks[1], (E,), jnp.float32)
    s1, be1, mu1 = bn(ks[2], ks[3], ks[4], ks[5], E)
    w1f = w1 * s1[None, :]
    c1 = (b1 - mu1) * s1 + be1

    # depthwise: torch weight (E, 1, 3) -> (3, E)
    wdw = 0.3 * jax.random.normal(ks[6], (3, E), jnp.float32)
    bdw = 0.1 * jax.random.normal(ks[7], (E,), jnp.float32)
    s2, be2, mu2 = bn(ks[8], ks[9], ks[10], ks[11], E)
    wdwf = wdw * s2[None, :]
    c2 = (bdw - mu2) * s2 + be2

    # conv2: torch weight (C, E, 1) -> (E, C)   (distinct keys for every BN stat)
    w2 = 0.2 * jax.random.normal(ks[12], (E, C), jnp.float32)
    b2 = 0.1 * jax.random.normal(ks[13], (C,), jnp.float32)
    s3, be3, mu3 = bn(ks[14], ks[15], ks[16], ks[17], C)
    w2f = w2 * s3[None, :]
    c3 = (b2 - mu3) * s3 + be3

    return dict(
        w1=w1f.astype(mxu_dtype), c1=c1.reshape(1, E),
        wdw=wdwf, c2=c2.reshape(1, E),
        w2=w2f.astype(mxu_dtype), c3=c3.reshape(1, C),
    )


def irffn_reference(x_ncl, p):
    """Pure-JAX f32 reference using the same folded params (weights upcast to f32)."""
    x = jnp.transpose(x_ncl, (0, 2, 1))                     # (B, L, C)
    w1 = p["w1"].astype(jnp.float32)
    w2 = p["w2"].astype(jnp.float32)
    h1 = _gelu(jnp.einsum("blc,ce->ble", x, w1) + p["c1"])
    hp = jnp.pad(h1, ((0, 0), (1, 1), (0, 0)))
    h2 = (hp[:, :-2] * p["wdw"][0] + hp[:, 1:-1] * p["wdw"][1]
          + hp[:, 2:] * p["wdw"][2])
    h2 = _gelu(h2 + p["c2"])
    h3 = jnp.einsum("ble,ec->blc", h2, w2) + p["c3"]
    return jnp.transpose(x + h3, (0, 2, 1))


if __name__ == "__main__":
    B, C, L, R = 2, 4, 16, 4          # in_channels=4, R=4 -> exp_channels=16
    key = jax.random.PRNGKey(0)
    kx, kp = jax.random.split(key)

    x = jax.random.normal(kx, (B, C, L), jnp.float32)       # NCL, like PyTorch
    params = make_params(kp, C, R)

    out = jax.block_until_ready(irffn_forward(x, params))
    ref = jax.block_until_ready(irffn_reference(x, params))

    assert out.shape == (B, C, L)
    # Kernel uses bf16 MXU operands (f32 accumulation) -> compare with a loose-ish
    # tolerance against the all-f32 reference.
    np.testing.assert_allclose(np.asarray(out), np.asarray(ref),
                               rtol=5e-2, atol=5e-2)
    print("KERNEL_OK")
</pallas_src>

<mosaic_0001>
module attributes {stable_mosaic.version = 11 : i64} {
  func.func @irffn_kernel(%arg0: i32, %arg1: i32, %arg2: memref<1x16x4xf32, #tpu.memory_space<vmem>>, %arg3: memref<1x1x2x4xf32, #tpu.memory_space<vmem>>, %arg4: memref<4x16xbf16, #tpu.memory_space<vmem>>, %arg5: memref<1x16xf32, #tpu.memory_space<vmem>>, %arg6: memref<3x16xf32, #tpu.memory_space<vmem>>, %arg7: memref<1x16xf32, #tpu.memory_space<vmem>>, %arg8: memref<16x4xbf16, #tpu.memory_space<vmem>>, %arg9: memref<1x4xf32, #tpu.memory_space<vmem>>, %arg10: memref<1x16x4xf32, #tpu.memory_space<vmem>>) attributes {dimension_semantics = [#tpu.dimension_semantics<parallel>, #tpu.dimension_semantics<parallel>], iteration_bounds = array<i64: 2, 1>, scalar_prefetch = 0 : i64, scratch_operands = 0 : i64, tpu.core_type = #tpu.core_type<tc>, window_params = [{transform_indices = @transform_0, window_bounds = array<i64: 1, 16, 4>}, {transform_indices = @transform_1, window_bounds = array<i64: 1, 1, 2, 4>}, {pipeline_mode = #tpu.pipeline_mode<synchronous>, transform_indices = @transform_2, window_bounds = array<i64: 4, 16>}, {pipeline_mode = #tpu.pipeline_mode<synchronous>, transform_indices = @transform_3, window_bounds = array<i64: 1, 16>}, {pipeline_mode = #tpu.pipeline_mode<synchronous>, transform_indices = @transform_4, window_bounds = array<i64: 3, 16>}, {pipeline_mode = #tpu.pipeline_mode<synchronous>, transform_indices = @transform_5, window_bounds = array<i64: 1, 16>}, {pipeline_mode = #tpu.pipeline_mode<synchronous>, transform_indices = @transform_6, window_bounds = array<i64: 16, 4>}, {pipeline_mode = #tpu.pipeline_mode<synchronous>, transform_indices = @transform_7, window_bounds = array<i64: 1, 4>}, {transform_indices = @transform_8, window_bounds = array<i64: 1, 16, 4>}]} {
    %c0 = arith.constant 0 : index
    %c0_0 = arith.constant 0 : index
    %c0_1 = arith.constant 0 : index
    %0 = vector.load %arg2[%c0, %c0_0, %c0_1] : memref<1x16x4xf32, #tpu.memory_space<vmem>>, vector<1x16x4xf32>
    %1 = vector.shape_cast %0 : vector<1x16x4xf32> to vector<16x4xf32>
    %c0_2 = arith.constant 0 : index
    %c0_3 = arith.constant 0 : index
    %2 = vector.load %arg4[%c0_2, %c0_3] : memref<4x16xbf16, #tpu.memory_space<vmem>>, vector<4x16xbf16>
    %c0_4 = arith.constant 0 : index
    %c0_5 = arith.constant 0 : index
    %3 = vector.load %arg5[%c0_4, %c0_5] : memref<1x16xf32, #tpu.memory_space<vmem>>, vector<1x16xf32>
    %4 = arith.truncf %1 : vector<16x4xf32> to vector<16x4xbf16>
    %cst = arith.constant dense<0.000000e+00> : vector<16x16xf32>
    %5 = tpu.matmul %4, %2, %cst {dimension_numbers = #tpu.dot_dimension_numbers<[1], [0], [0], [1], [0, 0, 1, 1], [], []>} : vector<16x4xbf16>, vector<4x16xbf16>, vector<16x16xf32> -> vector<16x16xf32>
    %6 = vector.broadcast %3 : vector<1x16xf32> to vector<16x16xf32>
    %7 = arith.addf %5, %6 : vector<16x16xf32>
    %cst_6 = arith.constant 5.000000e-01 : f32
    %8 = vector.broadcast %cst_6 : f32 to vector<16x16xf32>
    %9 = arith.mulf %8, %7 : vector<16x16xf32>
    %10 = arith.mulf %7, %7 : vector<16x16xf32>
    %11 = arith.mulf %10, %7 : vector<16x16xf32>
    %cst_7 = arith.constant 4.471500e-02 : f32
    %12 = vector.broadcast %cst_7 : f32 to vector<16x16xf32>
    %13 = arith.mulf %12, %11 : vector<16x16xf32>
    %14 = arith.addf %7, %13 : vector<16x16xf32>
    %cst_8 = arith.constant 0.797884583 : f32
    %15 = vector.broadcast %cst_8 : f32 to vector<16x16xf32>
    %16 = arith.mulf %15, %14 : vector<16x16xf32>
    %17 = math.tanh %16 : vector<16x16xf32>
    %cst_9 = arith.constant 1.000000e+00 : f32
    %18 = vector.broadcast %cst_9 : f32 to vector<16x16xf32>
    %19 = arith.addf %18, %17 : vector<16x16xf32>
    %20 = arith.mulf %9, %19 : vector<16x16xf32>
    %c0_10 = arith.constant 0 : index
    %c0_11 = arith.constant 0 : index
    %c0_12 = arith.constant 0 : index
    %c0_13 = arith.constant 0 : index
    %21 = vector.load %arg3[%c0_10, %c0_11, %c0_12, %c0_13] : memref<1x1x2x4xf32, #tpu.memory_space<vmem>>, vector<1x1x2x4xf32>
    %22 = vector.shape_cast %21 : vector<1x1x2x4xf32> to vector<2x4xf32>
    %23 = arith.truncf %22 : vector<2x4xf32> to vector<2x4xbf16>
    %cst_14 = arith.constant dense<0.000000e+00> : vector<2x16xf32>
    %24 = tpu.matmul %23, %2, %cst_14 {dimension_numbers = #tpu.dot_dimension_numbers<[1], [0], [0], [1], [0, 0, 1, 1], [], []>} : vector<2x4xbf16>, vector<4x16xbf16>, vector<2x16xf32> -> vector<2x16xf32>
    %25 = vector.broadcast %3 : vector<1x16xf32> to vector<2x16xf32>
    %26 = arith.addf %24, %25 : vector<2x16xf32>
    %cst_15 = arith.constant 5.000000e-01 : f32
    %27 = vector.broadcast %cst_15 : f32 to vector<2x16xf32>
    %28 = arith.mulf %27, %26 : vector<2x16xf32>
    %29 = arith.mulf %26, %26 : vector<2x16xf32>
    %30 = arith.mulf %29, %26 : vector<2x16xf32>
    %cst_16 = arith.constant 4.471500e-02 : f32
    %31 = vector.broadcast %cst_16 : f32 to vector<2x16xf32>
    %32 = arith.mulf %31, %30 : vector<2x16xf32>
    %33 = arith.addf %26, %32 : vector<2x16xf32>
    %cst_17 = arith.constant 0.797884583 : f32
    %34 = vector.broadcast %cst_17 : f32 to vector<2x16xf32>
    %35 = arith.mulf %34, %33 : vector<2x16xf32>
    %36 = math.tanh %35 : vector<2x16xf32>
    %cst_18 = arith.constant 1.000000e+00 : f32
    %37 = vector.broadcast %cst_18 : f32 to vector<2x16xf32>
    %38 = arith.addf %37, %36 : vector<2x16xf32>
    %39 = arith.mulf %28, %38 : vector<2x16xf32>
    %c0_i32 = arith.constant 0 : i32
    %40 = arith.cmpi sgt, %arg1, %c0_i32 : i32
    %41 = arith.extui %40 : i1 to i32
    %42 = arith.sitofp %41 : i32 to f32
    %c0_i32_19 = arith.constant 0 : i32
    %43 = arith.cmpi slt, %arg1, %c0_i32_19 : i32
    %44 = arith.extui %43 : i1 to i32
    %45 = arith.sitofp %44 : i32 to f32
    %46 = vector.extract_strided_slice %39 {offsets = [0, 0], sizes = [1, 16], strides = [1, 1]} : vector<2x16xf32> to vector<1x16xf32>
    %47 = vector.broadcast %42 : f32 to vector<1x16xf32>
    %48 = arith.mulf %46, %47 : vector<1x16xf32>
    %49 = vector.extract_strided_slice %39 {offsets = [1, 0], sizes = [1, 16], strides = [1, 1]} : vector<2x16xf32> to vector<1x16xf32>
    %50 = vector.broadcast %45 : f32 to vector<1x16xf32>
    %51 = arith.mulf %49, %50 : vector<1x16xf32>
    %c0_20 = arith.constant 0 : index
    %c0_21 = arith.constant 0 : index
    %52 = vector.load %arg6[%c0_20, %c0_21] : memref<3x16xf32, #tpu.memory_space<vmem>>, vector<3x16xf32>
    %53 = tpu.iota {dimensions = array<i32: 0>} : vector<16x1xi32>
    %c0_i32_22 = arith.constant 0 : i32
    %54 = vector.broadcast %c0_i32_22 : i32 to vector<16x1xi32>
    %55 = arith.cmpi eq, %53, %54 : vector<16x1xi32>
    %c1_i32 = arith.constant 1 : i32
    %56 = tpu.dynamic_rotate %20 by %c1_i32 dim 0 : vector<16x16xf32>, i32 -> vector<16x16xf32>
    %57 = vector.shape_cast %55 : vector<16x1xi1> to vector<16x1xi1>
    %58 = vector.broadcast %57 : vector<16x1xi1> to vector<16x16xi1>
    %59 = vector.shape_cast %48 : vector<1x16xf32> to vector<1x16xf32>
    %60 = vector.broadcast %59 : vector<1x16xf32> to vector<16x16xf32>
    %61 = arith.select %58, %60, %56 : vector<16x16xi1>, vector<16x16xf32>
    %c15_i32 = arith.constant 15 : i32
    %62 = vector.broadcast %c15_i32 : i32 to vector<16x1xi32>
    %63 = arith.cmpi eq, %53, %62 : vector<16x1xi32>
    %c15_i32_23 = arith.constant 15 : i32
    %64 = tpu.dynamic_rotate %20 by %c15_i32_23 dim 0 : vector<16x16xf32>, i32 -> vector<16x16xf32>
    %65 = vector.shape_cast %63 : vector<16x1xi1> to vector<16x1xi1>
    %66 = vector.broadcast %65 : vector<16x1xi1> to vector<16x16xi1>
    %67 = vector.shape_cast %51 : vector<1x16xf32> to vector<1x16xf32>
    %68 = vector.broadcast %67 : vector<1x16xf32> to vector<16x16xf32>
    %69 = arith.select %66, %68, %64 : vector<16x16xi1>, vector<16x16xf32>
    %70 = vector.extract_strided_slice %52 {offsets = [0, 0], sizes = [1, 16], strides = [1, 1]} : vector<3x16xf32> to vector<1x16xf32>
    %71 = vector.broadcast %70 : vector<1x16xf32> to vector<16x16xf32>
    %72 = arith.mulf %61, %71 : vector<16x16xf32>
    %73 = vector.extract_strided_slice %52 {offsets = [1, 0], sizes = [1, 16], strides = [1, 1]} : vector<3x16xf32> to vector<1x16xf32>
    %74 = vector.broadcast %73 : vector<1x16xf32> to vector<16x16xf32>
    %75 = arith.mulf %20, %74 : vector<16x16xf32>
    %76 = arith.addf %72, %75 : vector<16x16xf32>
    %77 = vector.extract_strided_slice %52 {offsets = [2, 0], sizes = [1, 16], strides = [1, 1]} : vector<3x16xf32> to vector<1x16xf32>
    %78 = vector.broadcast %77 : vector<1x16xf32> to vector<16x16xf32>
    %79 = arith.mulf %69, %78 : vector<16x16xf32>
    %80 = arith.addf %76, %79 : vector<16x16xf32>
    %c0_24 = arith.constant 0 : index
    %c0_25 = arith.constant 0 : index
    %81 = vector.load %arg7[%c0_24, %c0_25] : memref<1x16xf32, #tpu.memory_space<vmem>>, vector<1x16xf32>
    %82 = vector.broadcast %81 : vector<1x16xf32> to vector<16x16xf32>
    %83 = arith.addf %80, %82 : vector<16x16xf32>
    %cst_26 = arith.constant 5.000000e-01 : f32
    %84 = vector.broadcast %cst_26 : f32 to vector<16x16xf32>
    %85 = arith.mulf %84, %83 : vector<16x16xf32>
    %86 = arith.mulf %83, %83 : vector<16x16xf32>
    %87 = arith.mulf %86, %83 : vector<16x16xf32>
    %cst_27 = arith.constant 4.471500e-02 : f32
    %88 = vector.broadcast %cst_27 : f32 to vector<16x16xf32>
    %89 = arith.mulf %88, %87 : vector<16x16xf32>
    %90 = arith.addf %83, %89 : vector<16x16xf32>
    %cst_28 = arith.constant 0.797884583 : f32
    %91 = vector.broadcast %cst_28 : f32 to vector<16x16xf32>
    %92 = arith.mulf %91, %90 : vector<16x16xf32>
    %93 = math.tanh %92 : vector<16x16xf32>
    %cst_29 = arith.constant 1.000000e+00 : f32
    %94 = vector.broadcast %cst_29 : f32 to vector<16x16xf32>
    %95 = arith.addf %94, %93 : vector<16x16xf32>
    %96 = arith.mulf %85, %95 : vector<16x16xf32>
    %c0_30 = arith.constant 0 : index
    %c0_31 = arith.constant 0 : index
    %97 = vector.load %arg8[%c0_30, %c0_31] : memref<16x4xbf16, #tpu.memory_space<vmem>>, vector<16x4xbf16>
    %98 = arith.truncf %96 : vector<16x16xf32> to vector<16x16xbf16>
    %cst_32 = arith.constant dense<0.000000e+00> : vector<16x4xf32>
    %99 = tpu.matmul %98, %97, %cst_32 {dimension_numbers = #tpu.dot_dimension_numbers<[1], [0], [0], [1], [0, 0, 1, 1], [], []>} : vector<16x16xbf16>, vector<16x4xbf16>, vector<16x4xf32> -> vector<16x4xf32>
    %100 = arith.addf %1, %99 : vector<16x4xf32>
    %c0_33 = arith.constant 0 : index
    %c0_34 = arith.constant 0 : index
    %101 = vector.load %arg9[%c0_33, %c0_34] : memref<1x4xf32, #tpu.memory_space<vmem>>, vector<1x4xf32>
    %102 = vector.broadcast %101 : vector<1x4xf32> to vector<16x4xf32>
    %103 = arith.addf %100, %102 : vector<16x4xf32>
    %c0_35 = arith.constant 0 : index
    %c0_36 = arith.constant 0 : index
    %c0_37 = arith.constant 0 : index
    %104 = vector.load %arg10[%c0_35, %c0_36, %c0_37] : memref<1x16x4xf32, #tpu.memory_space<vmem>>, vector<1x16x4xf32>
    %105 = vector.shape_cast %104 : vector<1x16x4xf32> to vector<16x4xf32>
    %106 = vector.shape_cast %103 : vector<16x4xf32> to vector<1x16x4xf32>
    tpu.vector_store %arg10[%c0_35, %c0_36, %c0_37], %106 {strides = array<i32>} : memref<1x16x4xf32, #tpu.memory_space<vmem>>, vector<1x16x4xf32>,
    return
  }
  func.func @transform_0(%arg0: i32, %arg1: i32) -> (i32, i32, i32) {
    %c0_i32 = arith.constant 0 : i32
    %c0_i32_0 = arith.constant 0 : i32
    return %arg0, %arg1, %c0_i32 : i32, i32, i32
  }
  func.func @transform_1(%arg0: i32, %arg1: i32) -> (i32, i32, i32, i32) {
    %c0_i32 = arith.constant 0 : i32
    %c0_i32_0 = arith.constant 0 : i32
    %c0_i32_1 = arith.constant 0 : i32
    return %arg0, %arg1, %c0_i32, %c0_i32_0 : i32, i32, i32, i32
  }
  func.func @transform_2(%arg0: i32, %arg1: i32) -> (i32, i32) {
    %c0_i32 = arith.constant 0 : i32
    %c0_i32_0 = arith.constant 0 : i32
    %c0_i32_1 = arith.constant 0 : i32
    return %c0_i32, %c0_i32_0 : i32, i32
  }
  func.func @transform_3(%arg0: i32, %arg1: i32) -> (i32, i32) {
    %c0_i32 = arith.constant 0 : i32
    %c0_i32_0 = arith.constant 0 : i32
    %c0_i32_1 = arith.constant 0 : i32
    return %c0_i32, %c0_i32_0 : i32, i32
  }
  func.func @transform_4(%arg0: i32, %arg1: i32) -> (i32, i32) {
    %c0_i32 = arith.constant 0 : i32
    %c0_i32_0 = arith.constant 0 : i32
    %c0_i32_1 = arith.constant 0 : i32
    return %c0_i32, %c0_i32_0 : i32, i32
  }
  func.func @transform_5(%arg0: i32, %arg1: i32) -> (i32, i32) {
    %c0_i32 = arith.constant 0 : i32
    %c0_i32_0 = arith.constant 0 : i32
    %c0_i32_1 = arith.constant 0 : i32
    return %c0_i32, %c0_i32_0 : i32, i32
  }
  func.func @transform_6(%arg0: i32, %arg1: i32) -> (i32, i32) {
    %c0_i32 = arith.constant 0 : i32
    %c0_i32_0 = arith.constant 0 : i32
    %c0_i32_1 = arith.constant 0 : i32
    return %c0_i32, %c0_i32_0 : i32, i32
  }
  func.func @transform_7(%arg0: i32, %arg1: i32) -> (i32, i32) {
    %c0_i32 = arith.constant 0 : i32
    %c0_i32_0 = arith.constant 0 : i32
    %c0_i32_1 = arith.constant 0 : i32
    return %c0_i32, %c0_i32_0 : i32, i32
  }
  func.func @transform_8(%arg0: i32, %arg1: i32) -> (i32, i32, i32) {
    %c0_i32 = arith.constant 0 : i32
    %c0_i32_0 = arith.constant 0 : i32
    return %arg0, %arg1, %c0_i32 : i32, i32, i32
  }
}

</mosaic_0001>

<bundles_post_ra>
// kernel: tpu_custom_call.1
= control target key start
LH: loop header
LB: loop body
LE: loop exit
PB: predicated region body
PF: predicated region fallthrough
CT: control target
= control target key end

     0   :  { %s925_s27 = smov 0   ;;  %s927_s28 = smov 0   ;;  %s1002_s0 = inlined_call_operand.vmem [shape: f32[2,16,4], index: 0, kind: input, shape index: {}]   ;;  %s1003_s1 = inlined_call_operand.vmem [shape: f32[2,1,2,4], index: 1, kind: input, shape index: {}]   ;;  %s1004_s2 = inlined_call_operand.vmem [shape: bf16[4,16], index: 2, kind: input, shape index: {}]   ;;  %s1005_s3 = inlined_call_operand.vmem [shape: f32[1,16], index: 3, kind: input, shape index: {}]   ;;  %s1006_s4 = inlined_call_operand.vmem [shape: f32[3,16], index: 4, kind: input, shape index: {}]   ;;  %s1007_s5 = inlined_call_operand.vmem [shape: f32[1,16], index: 5, kind: input, shape index: {}]   ;;  %s1008_s6 = inlined_call_operand.vmem [shape: bf16[16,4], index: 6, kind: input, shape index: {}]   ;;  %s1009_s7 = inlined_call_operand.vmem [shape: f32[1,4], index: 7, kind: input, shape index: {}]   ;;  %s1010_s8 = inlined_call_operand.vmem [shape: f32[2,16,4], index: 8, kind: output, shape index: {}]  }
   0x1   :  { %s929_s29 = smov 0  }
   0x2 LB: > { %s30_s30 = sadd.s32 1, %s872_s28  ;;  %p776_p0 = scmp.ge.s32.totalorder %s876_s29, 1  ;;  %s876_s29 = sphi %s929_s29, %s18_s29   ;;  %s872_s28 = sphi %s927_s28, %s1012_s28   ;;  %s868_s27 = sphi %s925_s27, %s1011_s27  }
   0x3   : > { %p32_p1 = scmp.ge.s32.totalorder %s30_s30, 2  ;;  %p297_p2 = scmp.lt.s32.totalorder %s876_s29, 3 }
   0x5   : > { %s1014_s30 = smov (%p32_p1, %s30_s30), 0  ;;  %p298_p3 = pnand %p776_p0, %p297_p2 }
   0x6   : > { %p347_p4 = scmp.lt.s32.totalorder (!%p298_p3), %s868_s27, 1 }
   0x7   : > { %301 = sbr.rel (%p298_p3) target bundleno = 489 (0x1e9), region = 52 }
   0xc   : > { %v376_v0 = vld [vmem:[%s1004_s2] sm:$0x3]  ;;  %vm389_vm0 = vcmask 1041408   ;;  %v878_v1 = vmov 0.0   ;;  %s1016_s27 = smov (!%p347_p4, %s868_s27), 1  ;;  %vm879_vm1 = vmmov 0   ;;  %v517_v36 = vlaneseq }
   0xd   : > { %799 = vmatprep.subr.bf16.mxu0 %v878_v1  ;;  %805 = vmatprep.subr.bf16.mxu1 %v878_v1  ;;  %v391_v2 = vsel %vm389_vm0, %v376_v0, 0  ;;  %s791_s11 = sshll.u32 %s1016_s27, 4  ;;  %s779_s12 = sshll.u32 %s1016_s27, 1  ;;  %vm385_vm2 = vcmask 31744   ;;  %v843_v8 = vld [vmem:[%s1008_s6] sm:$0xff]   ;;  %vm612_vm7 = vcmask 130048  }
   0xe   : > { %800 = vmatpush3.bf16.msra.mxu0 %v391_v2  ;;  %806 = vmatpush3.bf16.msra.mxu1 %v391_v2  ;;  %s354_s15 = scalar_lea.vmem %s1002_s0, %s791_s11  ;;  %s362_s18 = scalar_lea.vmem %s1003_s1, %s779_s12  ;;  %v782_v9 = vld [vmem:[%s1005_s3] ss:$0 sm:$0xff]  ;;  %v518_v37 = vshrl.u32 %v517_v36, 7 }
   0xf   : > { %801 = vmatprep.mubr.msk.bf16.mxu0 %vm879_vm1, %v878_v1  ;;  %807 = vmatprep.mubr.msk.bf16.mxu1 %vm879_vm1, %v878_v1  ;;  %v960_v3 = vld [vmem:[%s354_s15] sm:$0xff]  ;;  %v962_v4 = vld [vmem:[%s354_s15 + $0x8] sm:$0xff]  ;;  %s371_s14 = scalar_lea.vmem %s1010_s8, %s791_s11 }
  0x10   : > { %811 = vmatprep.subr.bf16.mxu0 %v878_v1  ;;  %v452_v5 = vld [vmem:[%s362_s18] sm:$0x3]  ;;  %v378_v6 = vpack.c.bf16 %v962_v4, %v960_v3  ;;  %v550_v44 = vsub.s32 1, %v518_v37  ;;  %v570_v45 = vsub.s32 2, %v518_v37  ;;  %v519_v49 = vadd.s32 8, %v518_v37 }
  0x11   : > { %v453_v7 = vpack.c.bf16 %v452_v5, %v452_v5  ;;  %v516_v47 = vld [vmem:[%s1006_s4] sm:$0x7]  ;;  %v533_v51 = vsub.s32 0, %v518_v37  ;;  %vm520_vm3 = vcmp.eq.s32.totalorder %v518_v37, 0  ;;  %vm524_vm4 = vcmp.lt.s32.totalorder %v518_v37, 1 }
  0x12   : > { %802 = vmatmul.mubr.msk.bf16.vlgmr.msra.gmra.mxu0 %vm385_vm2, %v378_v6  ;;  %v563_v55 = vrot.slane %v516_v47, %v550_v44  ;;  %v571_v56 = vrot.slane %v516_v47, %v570_v45  ;;  %vm538_vm5 = vcmp.eq.s32.totalorder %v519_v49, 15  ;;  %vm541_vm6 = vcmp.lt.s32.totalorder %v518_v37, 7 }
  0x13   : > { %808 = vmatmul.mubr.msk.bf16.vlgmr.msra.gmra.mxu1 %vm385_vm2, %v453_v7  ;;  %813 = vmatprep.mubr.msk.bf16.mxu0 %vm879_vm1, %v878_v1  ;;  %v557_v57 = vrot.slane %v516_v47, %v533_v51 }
  0x14   : > { %812 = vmatpush3.bf16.msra.mxu0 %v843_v8 }
  0xd2   : > { %v427_v10 = vpop.f32.mrf.mxu0 }
  0xd3   : > { %v491_v11 = vpop.f32.mrf.mxu1  ;;  %v428_v12 = vadd.f32 %v782_v9, %v427_v10 }
  0xd4   : > { %v492_v13 = vadd.f32 %v782_v9, %v491_v11  ;;  %v803_v14 = vpop.f32.mrf.mxu0 }
  0xd5   : > { %v809_v15 = vpop.f32.mrf.mxu1  ;;  %v436_v16 = vmul.f32 %v428_v12, %v428_v12  ;;  %v434_v43 = vmul.f32 0.5, %v428_v12 }
  0xd6   : > { %v498_v17 = vmul.f32 %v492_v13, %v492_v13  ;;  %v430_v18 = vpop.f32.mrf.mxu0  ;;  %v497_v41 = vmul.f32 0.5, %v492_v13 }
  0xd7   : > { %v494_v19 = vpop.f32.mrf.mxu1  ;;  %v438_v20 = vmul.f32 %v436_v16, %v428_v12  ;;  %v431_v22 = vadd.f32 %v782_v9, %v430_v18 }
  0xd8   : > { %v499_v21 = vmul.f32 %v498_v17, %v492_v13  ;;  %v804_v23 = vpop.f32.mrf.mxu0  ;;  %v785_v17 = vld [vmem:[%s1007_s5] ss:$0 sm:$0xff] }
  0xd9   : > { %v810_v24 = vpop.f32.mrf.mxu1  ;;  %v440_v25 = vmul.f32 0.044715, %v438_v20  ;;  %v437_v27 = vmul.f32 %v431_v22, %v431_v22  ;;  %v435_v52 = vmul.f32 0.5, %v431_v22 }
  0xda   : > { %v500_v26 = vmul.f32 0.044715, %v499_v21 }
  0xdb   : > { %v442_v28 = vadd.f32 %v440_v25, %v428_v12  ;;  %v439_v30 = vmul.f32 %v437_v27, %v431_v22 }
  0xdc   : > { %v501_v29 = vadd.f32 %v500_v26, %v492_v13 }
  0xdd   : > { %v444_v31 = vmul.f32 0.7978846, %v442_v28  ;;  %v441_v33 = vmul.f32 0.044715, %v439_v30 }
  0xde   : > { %v502_v32 = vmul.f32 0.7978846, %v501_v29 }
  0xdf   : > { %844 = vtanh.f32 %v444_v31  ;;  %v443_v34 = vadd.f32 %v441_v33, %v431_v22 }
  0xe0   : > { %846 = vtanh.f32 %v502_v32 }
  0xe1   : > { %v445_v35 = vmul.f32 0.7978846, %v443_v34 }
  0xe3   : > { %848 = vtanh.f32 %v445_v35 }
  0xec   : > { %v845_v38 = vpop.eup %844 }
  0xed   : > { %v847_v39 = vpop.eup %846  ;;  %v448_v40 = vadd.f32 1.0, %v845_v38 }
  0xee   : > { %v504_v42 = vadd.f32 1.0, %v847_v39 }
  0xef   : > { %v450_v50 = vmul.f32 %v448_v40, %v434_v43 }
  0xf0   : > { %v849_v46 = vpop.eup %848  ;;  %v505_v48 = vmul.f32 %v504_v42, %v497_v41  ;;  %v788_v42 = vld [vmem:[%s1009_s7] ss:$0 sm:$0xff] }
  0xf1   : > { %v449_v53 = vadd.f32 1.0, %v849_v46  ;;  %v522_v59 = vrot.slane %v450_v50, 7  ;;  %v539_v60 = vrot.slane %v450_v50, 1  ;;  %v564_v11 = vmul.f32 %v563_v55, %v450_v50 }
  0xf2   : > { %v513_v54 = vmul.f32 0.0, %v505_v48 }
  0xf3   : > { %v451_v58 = vmul.f32 %v449_v53, %v435_v52 }
  0xf4   : > { %v534_v63 = vrot.slane %v513_v54, %v533_v51  ;;  %v551_v0 = vrot.slane %v513_v54, %v550_v44 }
  0xf5   : > { %v523_v61 = vrot.slane %v451_v58, 7  ;;  %v540_v62 = vrot.slane %v451_v58, 1  ;;  %v565_v6 = vmul.f32 %v563_v55, %v451_v58 }
  0xf7   : > { %v525_v1 = vsel %vm524_vm4, %v522_v59, %v523_v61  ;;  %v526_v2 = vsel %vm524_vm4, %v523_v61, %v522_v59  ;;  %v543_v5 = vsel %vm541_vm6, %v540_v62, %v539_v60  ;;  %v542_v8 = vsel %vm541_vm6, %v539_v60, %v540_v62 }
  0xf8   : > { %v535_v7 = vsel %vm520_vm3, %v534_v63, %v526_v2  ;;  %v553_v9 = vsel %vm538_vm5, %v551_v0, %v543_v5  ;;  %v559_v10 = vmul.f32 %v557_v57, %v525_v1  ;;  %v572_v16 = vmul.f32 %v571_v56, %v542_v8 }
  0xf9   : > { %v558_v12 = vmul.f32 %v557_v57, %v535_v7  ;;  %v573_v13 = vmul.f32 %v571_v56, %v553_v9 }
  0xfa   : > { %v567_v14 = vadd.f32 %v565_v6, %v559_v10 }
  0xfb   : > { %v566_v15 = vadd.f32 %v564_v11, %v558_v12 }
  0xfc   : > { %v575_v18 = vadd.f32 %v573_v13, %v567_v14 }
  0xfd   : > { %v574_v19 = vadd.f32 %v572_v16, %v566_v15 }
  0xfe   : > { %v584_v20 = vadd.f32 %v785_v17, %v575_v18 }
  0xff   : > { %v583_v21 = vadd.f32 %v785_v17, %v574_v19 }
 0x100   : > { %v588_v22 = vmul.f32 %v584_v20, %v584_v20  ;;  %v586_v34 = vmul.f32 0.5, %v584_v20 }
 0x101   : > { %v587_v23 = vmul.f32 %v583_v21, %v583_v21  ;;  %v585_v36 = vmul.f32 0.5, %v583_v21 }
 0x102   : > { %v590_v24 = vmul.f32 %v588_v22, %v584_v20 }
 0x103   : > { %v589_v25 = vmul.f32 %v587_v23, %v583_v21 }
 0x104   : > { %v592_v26 = vmul.f32 0.044715, %v590_v24 }
 0x105   : > { %v591_v27 = vmul.f32 0.044715, %v589_v25 }
 0x106   : > { %v594_v28 = vadd.f32 %v592_v26, %v584_v20 }
 0x107   : > { %v593_v29 = vadd.f32 %v591_v27, %v583_v21 }
 0x108   : > { %v596_v30 = vmul.f32 0.7978846, %v594_v28 }
 0x109   : > { %v595_v31 = vmul.f32 0.7978846, %v593_v29 }
 0x10a   : > { %850 = vtanh.f32 %v596_v30 }
 0x10b   : > { %852 = vtanh.f32 %v595_v31 }
 0x117   : > { %v851_v32 = vpop.eup %850 }
 0x118   : > { %v853_v33 = vpop.eup %852  ;;  %v600_v35 = vadd.f32 1.0, %v851_v32 }
 0x119   : > { %v599_v37 = vadd.f32 1.0, %v853_v33 }
 0x11a   : > { %v602_v38 = vmul.f32 %v600_v35, %v586_v34 }
 0x11b   : > { %v601_v39 = vmul.f32 %v599_v37, %v585_v36 }
 0x11d   : > { %v605_v40 = vpack.c.bf16 %v602_v38, %v601_v39 }
 0x11f   : > { %814 = vmatmul.mubr.msk.bf16.vlgmr.msra.gmra.mxu0 %vm612_vm7, %v605_v40 }
 0x1df   : > { %v650_v41 = vpop.f32.mrf.mxu0 }
 0x1e0   : > { %v657_v43 = vadd.f32 %v650_v41, %v960_v3 }
 0x1e1   : > { %v815_v44 = vpop.f32.mrf.mxu0 }
 0x1e2   : > { %v666_v45 = vadd.f32 %v788_v42, %v657_v43 }
 0x1e3   : > { %v653_v46 = vpop.f32.mrf.mxu0 }
 0x1e4   : > { %668 = vst.msk [vmem:[%s371_s14] sm:$0xff] %vm385_vm2, %v666_v45  ;;  %v658_v47 = vadd.f32 %v653_v46, %v962_v4 }
 0x1e5   : > { %v816_v48 = vpop.f32.mrf.mxu0 }
 0x1e6   : > { %v667_v49 = vadd.f32 %v788_v42, %v658_v47 }
 0x1e8   : > { %669 = vst.msk [vmem:[%s371_s14 + $0x8] sm:$0xff] %vm385_vm2, %v667_v49 }
 0x1e9 PF: > { %s18_s29 = sadd.s32 1, %s876_s29   ;;  %s1011_s27 = smov %s872_s28 }
 0x1ea   : > { %p15_p5 = scmp.ge.s32.totalorder %s18_s29, 4   ;;  %s1012_s28 = smov %s1014_s30 }
 0x1ec   :  { %17 = sbr.rel (!%p15_p5) target bundleno = 2 (0x2), region = 85 }

</bundles_post_ra>
